<compile_context>
chip_gen: v7x
topology: tpu7x:2x2x1
jax: 0.10.0
libtpu: 0.0.40
codegen_flags: <defaults>
</compile_context>

<pallas_src>
import functools
import math

import jax
import jax.numpy as jnp
from jax.experimental import pallas as pl
from jax.experimental.pallas import tpu as pltpu

VMEM_LIMIT = 32 * 1024 * 1024  # safe scoped-VMEM request on v5e/v6e/v7x


def _round_up(n, m):
    return ((n + m - 1) // m) * m


def _row_tile(m, cap):
    # block second-to-last dim must be a multiple of 8 OR equal the full dim
    return m if m <= cap else cap


# -----------------------------------------------------------------------------
# Pallas kernels
# -----------------------------------------------------------------------------
def _linear_kernel(x_ref, w_ref, b_ref, o_ref):
    x = x_ref[...].astype(jnp.bfloat16)                 # bf16 MXU operands
    y = jnp.dot(x, w_ref[...], preferred_element_type=jnp.float32) + b_ref[...]
    o_ref[...] = y.astype(o_ref.dtype)


def _linear_res_ln_kernel(x_ref, w_ref, b_ref, r_ref, g_ref, beta_ref, o_ref):
    # y = x @ w + b ; z = residual + y ; out = LayerNorm(z)
    x = x_ref[...].astype(jnp.bfloat16)
    y = jnp.dot(x, w_ref[...], preferred_element_type=jnp.float32) + b_ref[...]
    z = r_ref[...].astype(jnp.float32) + y
    mu = jnp.mean(z, axis=-1, keepdims=True)
    zc = z - mu
    var = jnp.mean(zc * zc, axis=-1, keepdims=True)
    o_ref[...] = (zc * jax.lax.rsqrt(var + 1e-5) * g_ref[...] + beta_ref[...]).astype(o_ref.dtype)


def _ffn_res_ln_kernel(x_ref, w1_ref, b1_ref, w2_ref, b2_ref, g_ref, beta_ref, o_ref):
    # out = LayerNorm(x + linear2(relu(linear1(x))))
    x = x_ref[...]
    x16 = x.astype(jnp.bfloat16)
    h = jnp.dot(x16, w1_ref[...], preferred_element_type=jnp.float32) + b1_ref[...]
    h = jnp.maximum(h, 0.0)
    y = jnp.dot(h.astype(jnp.bfloat16), w2_ref[...], preferred_element_type=jnp.float32) + b2_ref[...]
    z = x.astype(jnp.float32) + y
    mu = jnp.mean(z, axis=-1, keepdims=True)
    zc = z - mu
    var = jnp.mean(zc * zc, axis=-1, keepdims=True)
    o_ref[...] = (zc * jax.lax.rsqrt(var + 1e-5) * g_ref[...] + beta_ref[...]).astype(o_ref.dtype)


def _mha_core_kernel(qk_ref, v_ref, o_ref, *, nhead, dh):
    # one batch element per grid step; all heads processed in one invocation
    E = nhead * dh
    qk = qk_ref[0]            # (L, 2E) bf16 : [:, :E] = Q, [:, E:] = K
    vv = v_ref[0]             # (L, E)  bf16
    scale = 1.0 / math.sqrt(dh)
    outs = []
    for h in range(nhead):
        qh = qk[:, h * dh:(h + 1) * dh]
        kh = qk[:, E + h * dh:E + (h + 1) * dh]
        vh = vv[:, h * dh:(h + 1) * dh]
        # contract last dims directly (no k.T transpose)
        s = jax.lax.dot_general(qh, kh, (((1,), (1,)), ((), ())),
                                preferred_element_type=jnp.float32) * scale
        s = s - jnp.max(s, axis=-1, keepdims=True)
        p = jnp.exp(s)
        p = p * pl.reciprocal(jnp.sum(p, axis=-1, keepdims=True), approx=True)
        outs.append(jnp.dot(p.astype(vh.dtype), vh, preferred_element_type=jnp.float32))
    o_ref[0] = jnp.concatenate(outs, axis=-1).astype(o_ref.dtype)


# -----------------------------------------------------------------------------
# Kernel wrappers (row-tiled grids, pipelined BlockSpecs)
# -----------------------------------------------------------------------------
def _compiler_params():
    return pltpu.CompilerParams(dimension_semantics=("parallel",),
                                vmem_limit_bytes=VMEM_LIMIT)


def linear(x, w, b, out_dtype=jnp.bfloat16, tm_cap=512):
    """y = x @ w + b, row-tiled over the flattened leading dims."""
    lead = x.shape[:-1]
    K = x.shape[-1]
    N = w.shape[-1]
    x2 = x.reshape(-1, K)
    M = x2.shape[0]
    tm = _row_tile(M, tm_cap)
    out = pl.pallas_call(
        _linear_kernel,
        grid=(pl.cdiv(M, tm),),
        in_specs=[pl.BlockSpec((tm, K), lambda i: (i, 0)),
                  pl.BlockSpec((K, N), lambda i: (0, 0)),
                  pl.BlockSpec((1, N), lambda i: (0, 0))],
        out_specs=pl.BlockSpec((tm, N), lambda i: (i, 0)),
        out_shape=jax.ShapeDtypeStruct((M, N), out_dtype),
        compiler_params=_compiler_params(),
    )(x2, w, b.reshape(1, N))
    return out.reshape(*lead, N)


def linear_res_ln(x, w, b, res, g, beta, out_dtype=jnp.bfloat16, tm_cap=512):
    """LayerNorm(res + (x @ w + b))  (fused out-proj + residual + LN)."""
    lead = x.shape[:-1]
    K = x.shape[-1]
    E = w.shape[-1]
    x2 = x.reshape(-1, K)
    r2 = res.reshape(-1, E)
    M = x2.shape[0]
    tm = _row_tile(M, tm_cap)
    out = pl.pallas_call(
        _linear_res_ln_kernel,
        grid=(pl.cdiv(M, tm),),
        in_specs=[pl.BlockSpec((tm, K), lambda i: (i, 0)),
                  pl.BlockSpec((K, E), lambda i: (0, 0)),
                  pl.BlockSpec((1, E), lambda i: (0, 0)),
                  pl.BlockSpec((tm, E), lambda i: (i, 0)),
                  pl.BlockSpec((1, E), lambda i: (0, 0)),
                  pl.BlockSpec((1, E), lambda i: (0, 0))],
        out_specs=pl.BlockSpec((tm, E), lambda i: (i, 0)),
        out_shape=jax.ShapeDtypeStruct((M, E), out_dtype),
        compiler_params=_compiler_params(),
    )(x2, w, b.reshape(1, E), r2, g.reshape(1, E), beta.reshape(1, E))
    return out.reshape(*lead, E)


def ffn_res_ln(x, w1, b1, w2, b2, g, beta, out_dtype=jnp.bfloat16, tm_cap=256):
    """LayerNorm(x + linear2(relu(linear1(x)))) (fused FFN + residual + LN)."""
    lead = x.shape[:-1]
    E = x.shape[-1]
    F = w1.shape[-1]
    x2 = x.reshape(-1, E)
    M = x2.shape[0]
    tm = _row_tile(M, tm_cap)   # smaller cap: (tm, F) f32 intermediate lives in VMEM (v7x 64 MiB)
    out = pl.pallas_call(
        _ffn_res_ln_kernel,
        grid=(pl.cdiv(M, tm),),
        in_specs=[pl.BlockSpec((tm, E), lambda i: (i, 0)),
                  pl.BlockSpec((E, F), lambda i: (0, 0)),
                  pl.BlockSpec((1, F), lambda i: (0, 0)),
                  pl.BlockSpec((F, E), lambda i: (0, 0)),
                  pl.BlockSpec((1, E), lambda i: (0, 0)),
                  pl.BlockSpec((1, E), lambda i: (0, 0)),
                  pl.BlockSpec((1, E), lambda i: (0, 0))],
        out_specs=pl.BlockSpec((tm, E), lambda i: (i, 0)),
        out_shape=jax.ShapeDtypeStruct((M, E), out_dtype),
        compiler_params=_compiler_params(),
    )(x2, w1, b1.reshape(1, F), w2, b2.reshape(1, E), g.reshape(1, E), beta.reshape(1, E))
    return out.reshape(*lead, E)


def mha_core(qk, v, nhead):
    """Scaled-dot-product attention; qk = concat(Q,K) proj (B,L,2E), v = V proj (B,L,E)."""
    B, L, E2 = qk.shape
    E = v.shape[-1]
    dh = E // nhead
    kernel = functools.partial(_mha_core_kernel, nhead=nhead, dh=dh)
    return pl.pallas_call(
        kernel,
        grid=(B,),
        in_specs=[pl.BlockSpec((1, L, E2), lambda i: (i, 0, 0)),
                  pl.BlockSpec((1, L, E), lambda i: (i, 0, 0))],
        out_specs=pl.BlockSpec((1, L, E), lambda i: (i, 0, 0)),
        out_shape=jax.ShapeDtypeStruct((B, L, E), jnp.bfloat16),
        compiler_params=_compiler_params(),
    )(qk, v)


# -----------------------------------------------------------------------------
# Multi-scale deformable bilinear sampling (grid_sample semantics: bilinear,
# align_corners=False, zero padding).  Implemented as a one-hot MXU matmul
# (attention weight folded into the interpolation matrix), which is efficient
# for the small per-level H*W used here.
# TODO(synk): for production-size feature maps (H*W >> 1k) replace the one-hot
# matmul with a Pallas manual-DMA gather (PrefetchScalarGridSpec) kernel.
# -----------------------------------------------------------------------------
def ms_deform_attn_sample(value, v_shapes, v_start, loc, weights):
    # value: (B, S, M, Dh) bf16; loc: (B, Lq, M, Lv, P, 2) f32; weights: (B, Lq, M, Lv, P) f32
    B, S, M, Dh = value.shape
    _, Lq, _, Lv, P, _ = loc.shape
    out = None
    for lid in range(Lv):
        H, W = v_shapes[lid]
        s0 = v_start[lid]
        hw = H * W
        v_l = value[:, s0:s0 + hw]                                   # (B, HW, M, Dh)
        v_l = jnp.transpose(v_l, (0, 2, 1, 3)).reshape(B * M, hw, Dh)
        g = jnp.transpose(loc[:, :, :, lid], (0, 2, 1, 3, 4)).reshape(B * M, Lq * P, 2)
        w_l = jnp.transpose(weights[:, :, :, lid], (0, 2, 1, 3)).reshape(B * M, Lq * P)

        gx = 2.0 * g[..., 0] - 1.0
        gy = 2.0 * g[..., 1] - 1.0
        x = ((gx + 1.0) * W - 1.0) / 2.0
        y = ((gy + 1.0) * H - 1.0) / 2.0
        x0 = jnp.floor(x)
        y0 = jnp.floor(y)
        x1 = x0 + 1.0
        y1 = y0 + 1.0
        wx1 = x - x0
        wx0 = 1.0 - wx1
        wy1 = y - y0
        wy0 = 1.0 - wy1
        iota = jnp.arange(hw, dtype=jnp.int32)

        def corner_mat(xi, yi, cw):
            valid = (xi >= 0) & (xi <= W - 1) & (yi >= 0) & (yi <= H - 1)
            xc = jnp.clip(xi, 0, W - 1).astype(jnp.int32)
            yc = jnp.clip(yi, 0, H - 1).astype(jnp.int32)
            idx = yc * W + xc                                        # (BM, Lq*P)
            onehot = (idx[..., None] == iota).astype(jnp.float32)    # (BM, Lq*P, HW)
            return onehot * (cw * valid.astype(jnp.float32) * w_l)[..., None]

        A = (corner_mat(x0, y0, wx0 * wy0) + corner_mat(x1, y0, wx1 * wy0)
             + corner_mat(x0, y1, wx0 * wy1) + corner_mat(x1, y1, wx1 * wy1))
        A = A.reshape(B * M, Lq, P, hw).sum(axis=2)                  # (BM, Lq, HW)
        samp = jnp.einsum("bqh,bhd->bqd", A.astype(value.dtype), v_l,
                          preferred_element_type=jnp.float32)        # (BM, Lq, Dh)
        out = samp if out is None else out + samp

    out = out.reshape(B, M, Lq, Dh).transpose(0, 2, 1, 3).reshape(B, Lq, M * Dh)
    return out


# -----------------------------------------------------------------------------
# DeformableBox3dAttention (with_rotation=False) — everything before out_proj
# (out_proj is fused with residual + norm1 in the caller).
# -----------------------------------------------------------------------------
def deformable_box3d_attention(query, value, v_shapes, v_start, ref_windows, p):
    B, Lq, E = query.shape
    M, Lv, P = p["num_head"], p["num_level"], p["num_point"]
    Dh = E // M

    # value projection (Pallas matmul, bf16 out)
    v = linear(value, p["value_proj_w"], p["value_proj_b"]).reshape(value.shape[0], -1, M, Dh)

    # fused attention / box / sampling-offset projection (single lane-dense matmul)
    y = linear(query, p["qproj_w"], p["qproj_b"], out_dtype=jnp.float32)
    n_attn, n_box, n_off = p["n_attn"], p["n_box"], p["n_off"]
    attn = y[..., :n_attn]
    offset_boxes = y[..., n_attn:n_attn + n_box]
    samp_off = y[..., n_attn + n_box:n_attn + n_box + n_off]

    attn = jax.nn.softmax(attn.reshape(B, Lq, M, Lv * P), axis=-1).reshape(B, Lq, M, Lv, P)
    offset_boxes = offset_boxes.reshape(B, Lq, M, Lv, 4)

    # _where_to_attend (with_rotation=False)
    rw = ref_windows[:, :, None, None, :]                            # (B, Lq, 1, 1, 7)
    ref_boxes = rw[..., jnp.array([0, 1, 3, 4])]
    ref_angles = rw[..., 6:7]
    angles = jnp.broadcast_to(ref_angles, (B, Lq, M, Lv, 1))
    boxes = ref_boxes + offset_boxes / 8.0 * ref_boxes[..., jnp.array([2, 3, 2, 3])]
    center = boxes[..., None, 0:2]
    size = boxes[..., None, 2:4]
    cos_a = jnp.cos(angles)
    sin_a = jnp.sin(angles)
    rot = jnp.stack([cos_a, -sin_a, sin_a, cos_a], axis=-1).reshape(B, Lq, M, Lv, 1, 2, 2)

    deformable_grid = samp_off.reshape(B, Lq, M, Lv, P, 2) / 188.0
    fixed = p["kernel_indices"] * jnp.maximum(size, 0.0)
    fixed = center + jnp.sum(fixed[..., None, :] * rot, axis=-1)
    grid = fixed + deformable_grid                                   # (B, Lq, M, Lv, P, 2)

    return ms_deform_attn_sample(v, v_shapes, v_start, grid, attn)   # (B, Lq, E) f32


# -----------------------------------------------------------------------------
# DGALayer forward
# -----------------------------------------------------------------------------
def dga_layer_forward(params, src, pos, src_shape, src_start_idx, ref_windows,
                      score_mask, keep_ratio):
    B, N, C = src.shape
    nhead = params["nhead"]

    # top-k / gather glue stays in plain JAX (data-dependent, no clean BlockSpec)
    foreground_num = math.ceil(score_mask.shape[1] * keep_ratio)
    select_score_mask, indices = jax.lax.top_k(score_mask, foreground_num)
    bidx = jnp.arange(B)[:, None]

    select_src = jnp.take_along_axis(src, indices[..., None], axis=1)
    select_pos = jnp.take_along_axis(pos, indices[..., None], axis=1)
    select_ref = jnp.take_along_axis(ref_windows, indices[..., None], axis=1)

    query_num = math.ceil(foreground_num * keep_ratio)
    query_indices = jax.lax.top_k(select_score_mask, query_num)[1]
    query_src = jnp.take_along_axis(select_src, query_indices[..., None], axis=1)
    query_pos = jnp.take_along_axis(select_pos, query_indices[..., None], axis=1)

    # ---- self attention: fused QK proj + V proj + batched-head core +
    #      fused out-proj + residual + query_norm
    sa = params["self_attn"]
    qk_in = query_src + query_pos
    qk = linear(qk_in, sa["wqk"], sa["bqk"])            # (B, Lq, 2E) bf16
    vv = linear(query_src, sa["wv"], sa["bv"])          # (B, Lq, E)  bf16
    attn_o = mha_core(qk, vv, nhead)                    # (B, Lq, E)  bf16
    query_src = linear_res_ln(attn_o, sa["wo"], sa["bo"], query_src,
                              params["query_norm_g"], params["query_norm_b"],
                              out_dtype=jnp.float32)

    select_src = select_src.at[bidx, query_indices].set(query_src)

    # ---- deformable cross attention; out_proj fused with residual + norm1
    ca = params["cross_attn"]
    sampled = deformable_box3d_attention(select_src + select_pos, src, src_shape,
                                         src_start_idx, select_ref, ca)
    select_src = linear_res_ln(sampled, ca["out_proj_w"], ca["out_proj_b"], select_src,
                               params["norm1_g"], params["norm1_b"],
                               out_dtype=jnp.bfloat16)

    # ---- FFN fused with residual + norm2
    select_src = ffn_res_ln(select_src, params["w1"], params["b1"],
                            params["w2"], params["b2"],
                            params["norm2_g"], params["norm2_b"],
                            out_dtype=src.dtype)

    output = src.at[bidx, indices].set(select_src)
    return output


# -----------------------------------------------------------------------------
# Deterministic parameter construction (weights stored in bf16 for the MXU,
# biases / LN params in f32; Q,K and attn/box/offset projections pre-fused).
# -----------------------------------------------------------------------------
def make_params(key, d_model, nhead, nlevel, dim_feedforward, kernel_size=5):
    P = kernel_size * kernel_size
    keys = jax.random.split(key, 16)

    def w(k, shape):
        return (0.02 * jax.random.normal(k, shape)).astype(jnp.float32)

    E = d_model
    wq, wk = w(keys[0], (E, E)), w(keys[1], (E, E))
    params = {
        "nhead": nhead,
        "self_attn": {
            "wqk": jnp.concatenate([wq, wk], axis=1).astype(jnp.bfloat16),
            "bqk": jnp.zeros((2 * E,), jnp.float32),
            "wv": w(keys[2], (E, E)).astype(jnp.bfloat16), "bv": jnp.zeros((E,), jnp.float32),
            "wo": w(keys[3], (E, E)).astype(jnp.bfloat16), "bo": jnp.zeros((E,), jnp.float32),
        },
        "query_norm_g": jnp.ones((E,), jnp.float32),
        "query_norm_b": jnp.zeros((E,), jnp.float32),
        "norm1_g": jnp.ones((E,), jnp.float32),
        "norm1_b": jnp.zeros((E,), jnp.float32),
        "norm2_g": jnp.ones((E,), jnp.float32),
        "norm2_b": jnp.zeros((E,), jnp.float32),
        "w1": w(keys[4], (E, dim_feedforward)).astype(jnp.bfloat16),
        "b1": jnp.zeros((dim_feedforward,), jnp.float32),
        "w2": w(keys[5], (dim_feedforward, E)).astype(jnp.bfloat16),
        "b2": jnp.zeros((E,), jnp.float32),
    }

    # kernel_indices (odd kernel_size branch)
    idx = jnp.linspace(-(kernel_size - 1) / 2.0, (kernel_size - 1) / 2.0, kernel_size)
    ii, jj = jnp.meshgrid(idx, idx, indexing="ij")
    kernel_indices = jnp.stack([jj, ii], axis=-1).reshape(-1, 2) / kernel_size   # (P, 2)

    # sampling_offsets bias init (DeformableBox3dAttention._reset_deformable_parameters)
    thetas = jnp.arange(nhead, dtype=jnp.float32) * (2.0 * math.pi / nhead)
    grid_init = jnp.stack([jnp.cos(thetas), jnp.sin(thetas)], axis=-1)
    grid_init = grid_init / jnp.max(jnp.abs(grid_init), axis=-1, keepdims=True)
    grid_init = jnp.tile(grid_init.reshape(nhead, 1, 1, 2), (1, nlevel, P, 1))
    grid_init = grid_init * jnp.arange(1, P + 1, dtype=jnp.float32).reshape(1, 1, P, 1)
    samp_off_b = grid_init.reshape(-1).astype(jnp.float32)

    # fused attention / box / sampling-offset projection (padded to multiple of 128 lanes)
    n_attn = nhead * nlevel * P
    n_box = nhead * nlevel * 4
    n_off = nhead * nlevel * P * 2
    qw = jnp.concatenate([w(keys[8], (E, n_attn)), w(keys[9], (E, n_box)),
                          w(keys[10], (E, n_off))], axis=1)
    qb = jnp.concatenate([jnp.zeros((n_attn,), jnp.float32),
                          jnp.zeros((n_box,), jnp.float32), samp_off_b], axis=0)
    n_tot = n_attn + n_box + n_off
    n_pad = _round_up(n_tot, 128) if n_tot > 128 else n_tot
    if n_pad != n_tot:
        qw = jnp.pad(qw, ((0, 0), (0, n_pad - n_tot)))
        qb = jnp.pad(qb, (0, n_pad - n_tot))

    params["cross_attn"] = {
        "num_head": nhead, "num_level": nlevel, "num_point": P,
        "kernel_indices": kernel_indices,
        "value_proj_w": w(keys[6], (E, E)).astype(jnp.bfloat16),
        "value_proj_b": jnp.zeros((E,), jnp.float32),
        "out_proj_w": w(keys[7], (E, E)).astype(jnp.bfloat16),
        "out_proj_b": jnp.zeros((E,), jnp.float32),
        "qproj_w": qw.astype(jnp.bfloat16),
        "qproj_b": qb.astype(jnp.float32),
        "n_attn": n_attn, "n_box": n_box, "n_off": n_off,
    }
    return params


# -----------------------------------------------------------------------------
if __name__ == "__main__":
    B = 2
    d_model = 32
    nhead = 4
    nlevel = 1
    dim_feedforward = 64
    keep_ratio = 0.5
    H = W = 8
    N = H * W  # token count (flattened level-0 feature map)

    key = jax.random.PRNGKey(0)
    kp, k1, k2, k3, k4, k5 = jax.random.split(key, 6)
    params = make_params(kp, d_model, nhead, nlevel, dim_feedforward)

    src = (0.1 * jax.random.normal(k1, (B, N, d_model))).astype(jnp.float32)
    pos = (0.1 * jax.random.normal(k2, (B, N, d_model))).astype(jnp.float32)
    score_mask = jax.random.uniform(k3, (B, N)).astype(jnp.float32)
    cxcy = jax.random.uniform(k4, (B, N, 2))
    wl = 0.05 + 0.15 * jax.random.uniform(k5, (B, N, 2))
    zeros = jnp.zeros((B, N, 1))
    angle = jax.random.uniform(jax.random.fold_in(k5, 1), (B, N, 1))
    # ref_windows columns: [cx, cy, cz, w, l, h, angle]
    ref_windows = jnp.concatenate([cxcy, zeros, wl, zeros, angle], axis=-1).astype(jnp.float32)

    src_shape = [(H, W)]
    src_start_idx = [0]

    out = dga_layer_forward(params, src, pos, src_shape, src_start_idx,
                            ref_windows, score_mask, keep_ratio)
    jax.block_until_ready(out)
    assert out.shape == (B, N, d_model)
    assert jnp.all(jnp.isfinite(out))
    print("KERNEL_OK")
</pallas_src>

<mosaic_0001>
module attributes {stable_mosaic.version = 11 : i64} {
  func.func @_linear_kernel(%arg0: i32, %arg1: memref<32x32xf32, #tpu.memory_space<vmem>>, %arg2: memref<32x64xbf16, #tpu.memory_space<vmem>>, %arg3: memref<1x64xf32, #tpu.memory_space<vmem>>, %arg4: memref<32x64xbf16, #tpu.memory_space<vmem>>) attributes {dimension_semantics = [#tpu.dimension_semantics<parallel>], iteration_bounds = array<i64: 1>, scalar_prefetch = 0 : i64, scratch_operands = 0 : i64, tpu.core_type = #tpu.core_type<tc>, window_params = [{transform_indices = @transform_0, window_bounds = array<i64: 32, 32>}, {pipeline_mode = #tpu.pipeline_mode<synchronous>, transform_indices = @transform_1, window_bounds = array<i64: 32, 64>}, {pipeline_mode = #tpu.pipeline_mode<synchronous>, transform_indices = @transform_2, window_bounds = array<i64: 1, 64>}, {transform_indices = @transform_3, window_bounds = array<i64: 32, 64>}]} {
    %c0 = arith.constant 0 : index
    %c0_0 = arith.constant 0 : index
    %0 = vector.load %arg1[%c0, %c0_0] : memref<32x32xf32, #tpu.memory_space<vmem>>, vector<32x32xf32>
    %1 = arith.truncf %0 : vector<32x32xf32> to vector<32x32xbf16>
    %c0_1 = arith.constant 0 : index
    %c0_2 = arith.constant 0 : index
    %2 = vector.load %arg2[%c0_1, %c0_2] : memref<32x64xbf16, #tpu.memory_space<vmem>>, vector<32x64xbf16>
    %cst = arith.constant dense<0.000000e+00> : vector<32x64xf32>
    %3 = tpu.matmul %1, %2, %cst {dimension_numbers = #tpu.dot_dimension_numbers<[1], [0], [0], [1], [0, 0, 1, 1], [], []>} : vector<32x32xbf16>, vector<32x64xbf16>, vector<32x64xf32> -> vector<32x64xf32>
    %c0_3 = arith.constant 0 : index
    %c0_4 = arith.constant 0 : index
    %4 = vector.load %arg3[%c0_3, %c0_4] : memref<1x64xf32, #tpu.memory_space<vmem>>, vector<1x64xf32>
    %5 = vector.broadcast %4 : vector<1x64xf32> to vector<32x64xf32>
    %6 = arith.addf %3, %5 : vector<32x64xf32>
    %7 = arith.truncf %6 : vector<32x64xf32> to vector<32x64xbf16>
    %c0_5 = arith.constant 0 : index
    %c0_6 = arith.constant 0 : index
    %8 = vector.load %arg4[%c0_5, %c0_6] : memref<32x64xbf16, #tpu.memory_space<vmem>>, vector<32x64xbf16>
    tpu.vector_store %arg4[%c0_5, %c0_6], %7 {strides = array<i32>} : memref<32x64xbf16, #tpu.memory_space<vmem>>, vector<32x64xbf16>,
    return
  }
  func.func @transform_0(%arg0: i32) -> (i32, i32) {
    %c0_i32 = arith.constant 0 : i32
    %c0_i32_0 = arith.constant 0 : i32
    return %arg0, %c0_i32 : i32, i32
  }
  func.func @transform_1(%arg0: i32) -> (i32, i32) {
    %c0_i32 = arith.constant 0 : i32
    %c0_i32_0 = arith.constant 0 : i32
    %c0_i32_1 = arith.constant 0 : i32
    return %c0_i32, %c0_i32_0 : i32, i32
  }
  func.func @transform_2(%arg0: i32) -> (i32, i32) {
    %c0_i32 = arith.constant 0 : i32
    %c0_i32_0 = arith.constant 0 : i32
    %c0_i32_1 = arith.constant 0 : i32
    return %c0_i32, %c0_i32_0 : i32, i32
  }
  func.func @transform_3(%arg0: i32) -> (i32, i32) {
    %c0_i32 = arith.constant 0 : i32
    %c0_i32_0 = arith.constant 0 : i32
    return %arg0, %c0_i32 : i32, i32
  }
}

</mosaic_0001>

<bundles_post_ra>
// kernel: tpu_custom_call.1
= control target key start
LH: loop header
LB: loop body
LE: loop exit
PB: predicated region body
PF: predicated region fallthrough
CT: control target
= control target key end

     0   :  { %8 = vsyncpa [#allocation3], 0  ;;  %s350_s0 = inlined_call_operand.hbm [shape: f32[32,32], index: 0, kind: input, shape index: {}]   ;;  %s351_s1 = inlined_call_operand.hbm [shape: bf16[32,64], index: 1, kind: input, shape index: {}]   ;;  %s352_s2 = inlined_call_operand.vmem [shape: f32[1,64], index: 2, kind: input, shape index: {}]   ;;  %s353_s3 = inlined_call_operand.hbm [shape: bf16[32,64], index: 3, kind: output, shape index: {}]  }
   0x1   :  { %9 = vsyncpa [#allocation6], 0 }
   0x2   :  { %10 = vsyncpa [#allocation4], 0  ;;  %s274_s12 = smov [#allocation2]   ;;  %s202_s16 = scalar_lea.hbm %s350_s0, 512 }
   0x3   :  { %s16_s13 = sshll.u32 %s274_s12, 4  ;;  %p203_p0 = scmp.ne.s32.totalorder %s350_s0, %s202_s16  ;;  %s17_s13 = int_to_ptr.vmem [resolvable:$true] %s16_s13 }
   0x4   :  { %p206_p1 = scmp.lt.u32.totalorder %s202_s16, %s350_s0 }
   0x6   :  { %p208_p2 = pnand %p206_p1, %p203_p0 }
   0x8   :  { %211 = shalt.err (!%p208_p2)
}
   0x9   :  { %s212_s21 = scalar_lea.vmem %s17_s13, 512  ;;  %p217_p4 = scmp.lt.s32.totalorder %s17_s13, %s17_s13 }
   0xa   :  { %p213_p3 = scmp.ne.s32.totalorder %s17_s13, %s212_s21  ;;  %p218_p5 = scmp.lt.s32.totalorder %s212_s21, %s212_s21 }
   0xc   :  { %p219_p6 = por %p218_p5, %p217_p4 }
   0xe   :  { %p220_p7 = pnand %p219_p6, %p213_p3 }
  0x10   :  { %223 = shalt.err (!%p220_p7)
}
  0x11   :  { %s275_s22 = smov 128   ;;  %s276_s23 = smov 8  }
  0x12   :  { %22 = dma.hbm_to_vmem [thread:$0]  %s350_s0, 512, %s17_s13, [#allocation3], %s275_s22, %s275_s22, %s276_s23  }
  0x13   :  { %s277_s26 = smov [#allocation5]   ;;  %s224_s30 = scalar_lea.hbm %s351_s1, 256 }
  0x14   :  { %s28_s27 = sshll.u32 %s277_s26, 4  ;;  %p225_p8 = scmp.ne.s32.totalorder %s351_s1, %s224_s30  ;;  %s29_s27 = int_to_ptr.vmem [resolvable:$true] %s28_s27 }
  0x15   :  { %p228_p9 = scmp.lt.u32.totalorder %s224_s30, %s351_s1 }
  0x17   :  { %p230_p10 = pnand %p228_p9, %p225_p8 }
  0x19   :  { %233 = shalt.err (!%p230_p10)
}
  0x1a   :  { %s234_s8 = scalar_lea.vmem %s29_s27, 256  ;;  %p239_p12 = scmp.lt.s32.totalorder %s29_s27, %s29_s27 }
  0x1b   :  { %p235_p11 = scmp.ne.s32.totalorder %s29_s27, %s234_s8  ;;  %p240_p13 = scmp.lt.s32.totalorder %s234_s8, %s234_s8 }
  0x1d   :  { %p241_p0 = por %p240_p13, %p239_p12 }
  0x1f   :  { %p242_p1 = pnand %p241_p0, %p235_p11 }
  0x21   :  { %245 = shalt.err (!%p242_p1)
}
  0x22   :  { %s278_s0 = smov 64   ;;  %s279_s9 = smov 4  }
  0x23   :  { %34 = dma.hbm_to_vmem [thread:$0]  %s351_s1, 256, %s29_s27, [#allocation6], %s278_s0, %s278_s0, %s279_s9  }
  0x24   :  { %268 = dma.done.wait [#allocation3], 512  }
  0x25   :  { %269 = vsyncadd [#allocation3], 4294966784 }
  0x26   :  { %270 = dma.done.wait [#allocation6], 256  }
  0x27   :  { %271 = vsyncadd [#allocation6], 4294967040  ;;  %v200_v0 = vld [vmem:[#allocation5] sm:$0xff]   ;;  %v201_v1 = vld [vmem:[#allocation5 + $0x8] sm:$0xff]   ;;  %vm73_vm0 = vcmask 261120   ;;  %vm145_vm1 = vcmask 519168  }
  0x28   :  { %185 = vmatprep.subr.bf16.mxu0 %v200_v0  ;;  %v44_v2 = vld [vmem:[#allocation2] sm:$0xff]  ;;  %v45_v3 = vld [vmem:[#allocation2 + $0x8] sm:$0xff]  ;;  %v46_v5 = vld [vmem:[#allocation2 + $0x10] sm:$0xff]  ;;  %s280_s13 = smov [#allocation7]  }
  0x29   :  { %186 = vmatpush3.bf16.msra.mxu0 %v200_v0  ;;  %v48_v4 = vpack.c.bf16 %v45_v3, %v44_v2  ;;  %v47_v6 = vld [vmem:[#allocation2 + $0x18] sm:$0xff]  ;;  %v168_v8 = vld [vmem:[%s352_s2] ss:$0 sm:$0xff]  ;;  %s155_s14 = sshll.u32 %s280_s13, 4  ;;  %s156_s14 = int_to_ptr.vmem [resolvable:$true] %s155_s14 }
  0x2a   :  { %187 = vmatprep.subr.bf16.mxu0 %v201_v1  ;;  %v49_v7 = vpack.c.bf16 %v47_v6, %v46_v5  ;;  %s246_s2 = scalar_lea.vmem %s156_s14, 256  ;;  %p251_p3 = scmp.lt.s32.totalorder %s156_s14, %s156_s14 }
  0x2b   :  { %189 = vmatprep.mubr.msk.bf16.mxu0 %vm73_vm0, %v48_v4  ;;  %p247_p2 = scmp.ne.s32.totalorder %s156_s14, %s246_s2  ;;  %p252_p4 = scmp.lt.s32.totalorder %s246_s2, %s246_s2 }
  0x2d   :  { %188 = vmatpush3.bf16.msra.mxu0 %v201_v1  ;;  %p253_p5 = por %p252_p4, %p251_p3 }
  0x2f   :  { %p254_p6 = pnand %p253_p5, %p247_p2 }
  0x30   :  { %190 = vmatmul.mubr.msk.bf16.vlgmr.msra.gmra.mrb[0].mxu0 %vm73_vm0, %v49_v7 }
 0x103   :  { %v191_v9 = vpop.f32.mrb[0].mxu0 }
 0x104   :  { %v123_v10 = vadd.f32 %v191_v9, %v168_v8  ;;  %v114_v11 = vpop.f32.mrb[1].mxu0 }
 0x105   :  { %v115_v12 = vadd.f32 %v168_v8, %v114_v11  ;;  %v192_v13 = vpop.f32.mrb[2].mxu0 }
 0x106   :  { %v179_v14 = vpack.c.bf16 %v123_v10, %v123_v10  ;;  %v126_v15 = vadd.f32 %v192_v13, %v168_v8  ;;  %v117_v16 = vpop.f32.mrb[3].mxu0 }
 0x107   :  { %v177_v17 = vpack.c.bf16 %v115_v12, %v115_v12  ;;  %v118_v18 = vadd.f32 %v168_v8, %v117_v16 }
 0x108   :  { %148 = vst.msk [vmem:[#allocation7 + $0x8] sm:$0xf] %vm145_vm1, %v179_v14  ;;  %v180_v19 = vpack.c.bf16 %v126_v15, %v126_v15 }
 0x109   :  { %146 = vst.msk [vmem:[#allocation7] sm:$0xf] %vm145_vm1, %v177_v17  ;;  %v178_v20 = vpack.c.bf16 %v118_v18, %v118_v18 }
 0x10a   :  { %149 = vst.msk [vmem:[#allocation7 + $0xc] sm:$0xf] %vm145_vm1, %v180_v19 }
 0x10b   :  { %147 = vst.msk [vmem:[#allocation7 + $0x4] sm:$0xf] %vm145_vm1, %v178_v20 }
 0x10c   :  { %257 = shalt.err (!%p254_p6)
}
 0x10d   :  { %s258_s17 = scalar_lea.hbm %s353_s3, 256 }
 0x10e   :  { %p259_p7 = scmp.ne.s32.totalorder %s353_s3, %s258_s17  ;;  %p262_p8 = scmp.lt.u32.totalorder %s258_s17, %s353_s3 }
 0x110   :  { %p264_p9 = pnand %p262_p8, %p259_p7 }
 0x112   :  { %267 = shalt.err (!%p264_p9)
}
 0x113   :  { %161 = dma.vmem_to_hbm [thread:$0]  %s156_s14, 256, %s353_s3, [#allocation4], %s278_s0, %s278_s0, %s279_s9  }
 0x114   :  { %272 = dma.done.wait [#allocation4], 256  }
 0x115   :  { %273 = vsyncadd [#allocation4], 4294967040 }
 0x116   :  { %165 = vsyncpa [#allocation3], 1 }
 0x117   :  { %166 = vsyncpa [#allocation6], 1 }
 0x118   :  { %167 = vsyncpa [#allocation4], 1 }

</bundles_post_ra>
